<compile_context>
chip_gen: v5e
topology: v5e:2x2
jax: 0.10.0
libtpu: 0.0.40
codegen_flags: <defaults>
</compile_context>

<pallas_src>
import functools

import jax
import jax.numpy as jnp
from jax.experimental import pallas as pl
from jax.experimental.pallas import tpu as pltpu

_LANES = 128        # TPU lane width (last dim of the slab)
_TILE_M = 2048      # max rows per block: 2048*128*4B = 1 MiB per tile
_SMALL_ROWS = 512   # at or below this many rows, one full-array block


def _clip_boxes_kernel(boxes_ref, out_ref, *, max_x, max_y):
    b = boxes_ref[...]
    # clamp(min=0)
    b = jnp.maximum(b, jnp.zeros((), dtype=b.dtype))
    # (1, LANES) per-lane clamp max: even lanes carry x coords (-> w-1), odd
    # lanes carry y coords (-> h-1).  One vreg, broadcast along sublanes in
    # the minimum below (no full-tile int32 intermediate).
    lane = jax.lax.broadcasted_iota(jnp.int32, (1, b.shape[-1]), dimension=1)
    max_row = jnp.where((lane & 1) == 0,
                        jnp.asarray(max_x, dtype=b.dtype),
                        jnp.asarray(max_y, dtype=b.dtype))
    out_ref[...] = jnp.minimum(b, max_row)


def _clip_slab(slab, max_x, max_y):
    """Run the clamp kernel on a lane-dense [M, 128] slab."""
    m_rows, lanes = slab.shape
    dtype = slab.dtype
    kernel = functools.partial(_clip_boxes_kernel, max_x=max_x, max_y=max_y)

    if m_rows <= _SMALL_ROWS:
        # Tiny input (<=256 KiB): one full-array block (full-array shape
        # satisfies the (8,128) rule); pipelining would not pay for itself.
        return pl.pallas_call(
            kernel,
            out_shape=jax.ShapeDtypeStruct((m_rows, lanes), dtype),
            in_specs=[pl.BlockSpec((m_rows, lanes), lambda: (0, 0))],
            out_specs=pl.BlockSpec((m_rows, lanes), lambda: (0, 0)),
        )(slab)

    # Gridded, double-buffered path.  Guarantee >= 2 pipeline steps by capping
    # the tile at half the rows (rounded up to the sublane multiple of 8); the
    # ragged last block is padded on read / masked on write by Pallas, so no
    # host-side padding to a tile multiple is needed.
    half8 = ((pl.cdiv(m_rows, 2) + 7) // 8) * 8
    tile_m = min(_TILE_M, half8)
    grid = pl.cdiv(m_rows, tile_m)
    # TODO(synk): on v7x, confirm via xprof that the "parallel" axis shards
    # across both TensorCores; if not, switch to pltpu.CORE_PARALLEL.
    return pl.pallas_call(
        kernel,
        out_shape=jax.ShapeDtypeStruct((m_rows, lanes), dtype),
        grid=(grid,),
        in_specs=[pl.BlockSpec((tile_m, lanes), lambda i: (i, 0))],
        out_specs=pl.BlockSpec((tile_m, lanes), lambda i: (i, 0)),
        compiler_params=pltpu.CompilerParams(
            dimension_semantics=("parallel",)),
    )(slab)


def clip_boxes(batch_imgs, batch_boxes):
    """Pallas implementation of ClipBoxes.forward.

    batch_imgs:  [B, C, H, W]  (only the static H, W are used)
    batch_boxes: [B, N, 4]     (x1, y1, x2, y2)
    """
    h, w = batch_imgs.shape[2], batch_imgs.shape[3]
    orig_shape = batch_boxes.shape
    dtype = batch_boxes.dtype
    total = int(batch_boxes.size)          # == B * N * 4, always a multiple of 4

    if total == 0:                         # N == 0: nothing to clip
        return batch_boxes

    max_x, max_y = w - 1, h - 1

    aligned = (total // _LANES) * _LANES   # length of the 128-aligned prefix
    tail_len = total - aligned

    if tail_len == 0:
        # Common case: free reshape of the caller's array, no wrapper copies.
        slab = batch_boxes.reshape(aligned // _LANES, _LANES)
        return _clip_slab(slab, max_x, max_y).reshape(orig_shape)

    flat = batch_boxes.reshape(-1)
    parts = []
    if aligned:
        head = flat[:aligned].reshape(aligned // _LANES, _LANES)
        parts.append(_clip_slab(head, max_x, max_y).reshape(-1))
    # <=127-element tail (a multiple of 4): plain jnp, fused by XLA.
    tail = flat[aligned:].reshape(-1, 4)
    max_row4 = jnp.asarray([max_x, max_y, max_x, max_y], dtype=dtype)
    tail = jnp.minimum(jnp.maximum(tail, jnp.zeros((), dtype=dtype)), max_row4)
    parts.append(tail.reshape(-1))

    out_flat = parts[0] if len(parts) == 1 else jnp.concatenate(parts)
    return out_flat.reshape(orig_shape)


def _reference_clip_boxes(batch_imgs, batch_boxes):
    h, w = batch_imgs.shape[2], batch_imgs.shape[3]
    b = jnp.clip(batch_boxes, 0)
    max_vals = jnp.asarray([w - 1, h - 1, w - 1, h - 1], dtype=batch_boxes.dtype)
    return jnp.minimum(b, max_vals)


if __name__ == "__main__":
    key = jax.random.PRNGKey(0)
    k_img, k_box, k_box2 = jax.random.split(key, 3)

    # --- small case: B*N*4 == 128 -> copy-free, single-block path ---
    B, C, H, W = 2, 4, 16, 16
    N = 16  # boxes per image
    batch_imgs = jax.random.normal(k_img, (B, C, H, W), dtype=jnp.float32)
    # Boxes spanning negative and > (dim-1) values to exercise both clamps.
    batch_boxes = jax.random.uniform(
        k_box, (B, N, 4), dtype=jnp.float32, minval=-10.0, maxval=30.0)

    out = jax.block_until_ready(clip_boxes(batch_imgs, batch_boxes))
    ref = _reference_clip_boxes(batch_imgs, batch_boxes)
    assert out.shape == batch_boxes.shape
    assert out.dtype == batch_boxes.dtype
    assert jnp.allclose(out, ref), "Pallas ClipBoxes mismatch vs reference (small)"

    # --- large, non-128-aligned case: gridded ragged-block path + jnp tail ---
    N_big = 66001   # 2*66001*4 = 528008 elems -> 4125 full rows + 8-elem tail
    big_boxes = jax.random.uniform(
        k_box2, (B, N_big, 4), dtype=jnp.float32, minval=-10.0, maxval=30.0)
    out_big = jax.block_until_ready(clip_boxes(batch_imgs, big_boxes))
    ref_big = _reference_clip_boxes(batch_imgs, big_boxes)
    assert out_big.shape == big_boxes.shape
    assert jnp.allclose(out_big, ref_big), "Pallas ClipBoxes mismatch vs reference (large)"

    print("KERNEL_OK")
</pallas_src>

<mosaic_0001>
module attributes {stable_mosaic.version = 11 : i64} {
  func.func @_clip_boxes_kernel(%arg0: memref<1x128xf32, #tpu.memory_space<vmem>>, %arg1: memref<1x128xf32, #tpu.memory_space<vmem>>) attributes {dimension_semantics = [], scalar_prefetch = 0 : i64, scratch_operands = 0 : i64, tpu.core_type = #tpu.core_type<tc>} {
    %c0 = arith.constant 0 : index
    %c0_0 = arith.constant 0 : index
    %0 = vector.load %arg0[%c0, %c0_0] : memref<1x128xf32, #tpu.memory_space<vmem>>, vector<1x128xf32>
    %cst = arith.constant 0.000000e+00 : f32
    %1 = vector.broadcast %cst : f32 to vector<1x128xf32>
    %2 = arith.maximumf %0, %1 : vector<1x128xf32>
    %3 = tpu.iota {dimensions = array<i32: 1>} : vector<1x128xi32>
    %c1_i32 = arith.constant 1 : i32
    %4 = vector.broadcast %c1_i32 : i32 to vector<1x128xi32>
    %5 = arith.andi %3, %4 : vector<1x128xi32>
    %c0_i32 = arith.constant 0 : i32
    %6 = vector.broadcast %c0_i32 : i32 to vector<1x128xi32>
    %7 = arith.cmpi eq, %5, %6 : vector<1x128xi32>
    %cst_1 = arith.constant 1.500000e+01 : f32
    %cst_2 = arith.constant 1.500000e+01 : f32
    %8 = vector.broadcast %cst_1 : f32 to vector<1x128xf32>
    %9 = vector.broadcast %cst_2 : f32 to vector<1x128xf32>
    %10 = arith.select %7, %8, %9 : vector<1x128xi1>, vector<1x128xf32>
    %11 = arith.minimumf %2, %10 : vector<1x128xf32>
    %c0_3 = arith.constant 0 : index
    %c0_4 = arith.constant 0 : index
    %12 = vector.load %arg1[%c0_3, %c0_4] : memref<1x128xf32, #tpu.memory_space<vmem>>, vector<1x128xf32>
    tpu.vector_store %arg1[%c0_3, %c0_4], %11 {strides = array<i32>} : memref<1x128xf32, #tpu.memory_space<vmem>>, vector<1x128xf32>,
    return
  }
}

</mosaic_0001>

<bundles_post_ra>
// kernel: tpu_custom_call.1
= control target key start
LH: loop header
LB: loop body
LE: loop exit
PB: predicated region body
PF: predicated region fallthrough
CT: control target
= control target key end

     0   :  { %6 = vsyncpa [#allocation3], 0  ;;  %s116_s0 = inlined_call_operand.hbm [shape: f32[1,128], index: 0, kind: input, shape index: {}]   ;;  %s117_s1 = inlined_call_operand.hbm [shape: f32[1,128], index: 1, kind: output, shape index: {}]  }
   0x1   :  { %7 = vsyncpa [#allocation4], 0  ;;  %s13_s8 = sshll.u32 %s116_s0, 4  ;;  %s98_s9 = smov [#allocation2]   ;;  %s14_s8 = int_to_ptr.hbm [resolvable:$true] %s13_s8 }
   0x2   :  { %s15_s10 = sshll.u32 %s98_s9, 4  ;;  %s16_s10 = int_to_ptr.vmem [resolvable:$true] %s15_s10 }
   0x3   :  { %18 = dma.hbm_to_vmem [thread:$0]  %s14_s8, 16, %s16_s10, [#allocation3]  }
   0x4   :  { %94 = dma.done.wait [#allocation3], 16  }
   0x5   :  { %95 = vsyncadd [#allocation3], 4294967280  ;;  %v23_v0 = vld [vmem:[#allocation2] sm:$0x1]  ;;  %s99_s11 = smov [#allocation5]   ;;  %s34_s15 = sshll.u32 %s117_s1, 4  ;;  %s35_s15 = int_to_ptr.hbm [resolvable:$true] %s34_s15 }
   0x6   :  { %s32_s12 = sshll.u32 %s99_s11, 4  ;;  %v24_v1 = vmax.f32 %v23_v0, 0.0  ;;  %s33_s12 = int_to_ptr.vmem [resolvable:$true] %s32_s12 }
   0x8   :  { %v25_v2 = vmin.f32 %v24_v1, 15.0 }
   0xa   :  { %26 = vst [vmem:[#allocation5] sm:$0x1] %v25_v2 }
   0xb   :  { %37 = dma.vmem_to_hbm [thread:$0]  %s33_s12, 16, %s35_s15, [#allocation4]  }
   0xc   :  { %96 = dma.done.wait [#allocation4], 16  }
   0xd   :  { %97 = vsyncadd [#allocation4], 4294967280 }
   0xe   :  { %42 = vsyncpa [#allocation3], 1 }
   0xf   :  { %43 = vsyncpa [#allocation4], 1 }

</bundles_post_ra>
